<compile_context>
chip_gen: v6e
topology: v6e:2x2x1
jax: 0.10.0
libtpu: 0.0.40
codegen_flags: <defaults>
</compile_context>

<pallas_src>
import math

import jax
import jax.numpy as jnp
import numpy as np
from jax.experimental import pallas as pl
from jax.experimental.pallas import tpu as pltpu

# Per-grid-step block budget (sum of input blocks + output block).  With
# Pallas' default double buffering this costs ~2x in VMEM, staying well under
# the scoped limit on every chip (v5e/v6e/v7x).
_BLOCK_BUDGET_BYTES = 8 * 1024 * 1024
_VMEM_LIMIT_BYTES = 32 * 1024 * 1024
_SMALL_FALLBACK_BYTES = 4 * 1024     # below this, jnp.concatenate wins
_MAX_TILE_ROWS = 1024                # lane path: 512-1024 rows ~ HBM roofline
_MAX_TILE_LANES = 4096               # sublane path: lane-tile cap (mult of 128)


def _sublane_pack(itemsize):
    # sublane packing: 8 for f32, 16 for bf16, 32 for int8
    return max(1, 32 // int(itemsize))


def _offsets(sizes):
    offs, off = [], 0
    for s in sizes:
        offs.append(off)
        off += s
    return offs


def _make_lane_concat_kernel(col_sizes):
    """out[:, off_i : off_i + c_i] = in_i  (concat along lane axis)."""
    offs = _offsets(col_sizes)

    def kernel(*refs):
        out_ref = refs[-1]
        for r, o, c in zip(refs[:-1], offs, col_sizes):
            out_ref[:, o:o + c] = r[...]

    return kernel


def _make_sublane_concat_kernel(chan_sizes):
    """out[:, off_i : off_i + C_i, :] = in_i  (concat along sublane axis)."""
    offs = _offsets(chan_sizes)

    def kernel(*refs):
        out_ref = refs[-1]
        for r, o, c in zip(refs[:-1], offs, chan_sizes):
            out_ref[:, o:o + c, :] = r[...]

    return kernel


def _concat_sublane_pallas(inputs, outer, sizes_d, inner, dtype, itemsize):
    """3-D layout (outer, C_i, inner); concat along the sublane axis."""
    total_d = sum(sizes_d)
    views = [x.reshape(outer, c, inner) for x, c in zip(inputs, sizes_d)]

    # bytes per (outer-row, lane) of block data (inputs + output)
    per_brow_lane = 2 * total_d * itemsize
    fit_lanes = max(128, (_BLOCK_BUDGET_BYTES // max(1, per_brow_lane)) // 128 * 128)
    tile_n = min(inner, _MAX_TILE_LANES, fit_lanes)
    if tile_n >= inner:
        tile_n = inner                       # full lane extent
    per_b = per_brow_lane * tile_n
    tile_b = max(1, _BLOCK_BUDGET_BYTES // per_b)
    tile_b = min(tile_b, outer)

    step_bytes = 2 * tile_b * total_d * tile_n * itemsize
    if 2 * step_bytes > _VMEM_LIMIT_BYTES:   # double-buffered must fit
        return None

    grid = (pl.cdiv(outer, tile_b), pl.cdiv(inner, tile_n))
    kernel = _make_sublane_concat_kernel(sizes_d)
    in_specs = [
        pl.BlockSpec((tile_b, c, tile_n), lambda i, j: (i, 0, j))
        for c in sizes_d
    ]
    out_spec = pl.BlockSpec((tile_b, total_d, tile_n), lambda i, j: (i, 0, j))

    return pl.pallas_call(
        kernel,
        out_shape=jax.ShapeDtypeStruct((outer, total_d, inner), dtype),
        grid=grid,
        in_specs=in_specs,
        out_specs=out_spec,
        compiler_params=pltpu.CompilerParams(
            dimension_semantics=("parallel", "parallel"),
            vmem_limit_bytes=_VMEM_LIMIT_BYTES,
        ),
    )(*views)


def _concat_lane_pallas(inputs, outer, sizes_d, inner, dtype, itemsize):
    """2-D layout (outer, C_i * inner); concat along the lane axis."""
    col_sizes = [c * inner for c in sizes_d]
    total_cols = sum(col_sizes)
    views = [x.reshape(outer, cc) for x, cc in zip(inputs, col_sizes)]

    pack = _sublane_pack(itemsize)
    per_row = 2 * total_cols * itemsize
    tile_r = max(1, _BLOCK_BUDGET_BYTES // max(1, per_row))
    tile_r = min(tile_r, _MAX_TILE_ROWS, outer)
    if tile_r < outer:
        # keep full sublane packs when the block does not span the full axis
        tile_r = max(pack, (tile_r // pack) * pack)

    step_bytes = 2 * tile_r * total_cols * itemsize
    if 2 * step_bytes > _VMEM_LIMIT_BYTES:   # double-buffered must fit
        return None

    grid = (pl.cdiv(outer, tile_r),)
    kernel = _make_lane_concat_kernel(col_sizes)
    in_specs = [
        pl.BlockSpec((tile_r, cc), lambda i: (i, 0)) for cc in col_sizes
    ]
    out_spec = pl.BlockSpec((tile_r, total_cols), lambda i: (i, 0))

    return pl.pallas_call(
        kernel,
        out_shape=jax.ShapeDtypeStruct((outer, total_cols), dtype),
        grid=grid,
        in_specs=in_specs,
        out_specs=out_spec,
        compiler_params=pltpu.CompilerParams(
            dimension_semantics=("parallel",),
            vmem_limit_bytes=_VMEM_LIMIT_BYTES,
        ),
    )(*views)


def concatenate(inputs, dim):
    """Pallas implementation of torch.cat(inputs, dim=dim)."""
    inputs = [jnp.asarray(x) for x in inputs]
    assert len(inputs) >= 1
    if len(inputs) == 1:
        return inputs[0]

    shape0 = inputs[0].shape
    ndim = len(shape0)
    d = dim % ndim  # support negative dims like torch.cat

    # Validate non-concat dims match.
    for x in inputs:
        if (len(x.shape) != ndim or x.shape[:d] != shape0[:d]
                or x.shape[d + 1:] != shape0[d + 1:]):
            raise ValueError(
                "All tensors must share every dimension except the "
                f"concatenation dim {d}: got {[tuple(t.shape) for t in inputs]}")

    # dtype promotion like torch.cat
    dtype = jnp.result_type(*inputs)
    inputs = [x.astype(dtype) for x in inputs]
    itemsize = jnp.dtype(dtype).itemsize

    sizes_d = [int(x.shape[d]) for x in inputs]
    total_d = sum(sizes_d)
    out_shape = shape0[:d] + (total_d,) + shape0[d + 1:]

    outer = int(math.prod(shape0[:d])) if d > 0 else 1
    inner = int(math.prod(shape0[d + 1:])) if d + 1 < ndim else 1

    out_bytes = int(math.prod(out_shape)) * itemsize
    if out_bytes <= _SMALL_FALLBACK_BYTES:
        # Launch overhead dominates for tiny concats.
        return jnp.concatenate(inputs, axis=d)

    if inner % 128 == 0:
        out2 = _concat_sublane_pallas(inputs, outer, sizes_d, inner, dtype,
                                      itemsize)
    else:
        out2 = _concat_lane_pallas(inputs, outer, sizes_d, inner, dtype,
                                   itemsize)

    if out2 is None:
        # Even a minimum tile would not fit VMEM -> let XLA handle it.
        return jnp.concatenate(inputs, axis=d)
    return out2.reshape(out_shape)


class Concatenate:
    """JAX/Pallas port of torchlayers.Concatenate."""

    def __init__(self, dim: int):
        self.dim = dim

    def __call__(self, inputs):
        return concatenate(inputs, self.dim)


def _check(out, ref, shape):
    jax.block_until_ready(out)
    assert out.shape == shape, (out.shape, shape)
    a = np.asarray(out, dtype=np.float32)
    b = np.asarray(ref, dtype=np.float32)
    assert np.array_equal(a, b)


if __name__ == "__main__":
    key = jax.random.PRNGKey(0)
    k1, k2, k3, k4, k5, k6, k7, k8, k9, k10 = jax.random.split(key, 10)

    # Case 1: docstring-style usage -- (64, 20) x3 along dim=1 -> (64, 60).
    # Lane-concat (2-D) path.
    t = jax.random.normal(k1, (64, 20), dtype=jnp.float32)
    out1 = Concatenate(dim=1)([t, t, t])
    _check(out1, jnp.concatenate([t, t, t], axis=1), (64, 60))

    # Case 2: NCHW channel concat (sublane/3-D path, inner = 16*16 = 256).
    a = jax.random.normal(k2, (2, 4, 16, 16), dtype=jnp.float32)
    b = jax.random.normal(k3, (2, 6, 16, 16), dtype=jnp.float32)
    c = jax.random.normal(k4, (2, 2, 16, 16), dtype=jnp.float32)
    out2 = Concatenate(dim=1)([a, b, c])
    _check(out2, jnp.concatenate([a, b, c], axis=1), (2, 12, 16, 16))

    # Case 3: negative dim (last axis), lane path.
    out3 = Concatenate(dim=-1)([t, t])
    _check(out3, jnp.concatenate([t, t], axis=-1), (64, 40))

    # Case 4: multi-grid-step lane path with a ragged last row tile.
    p = jax.random.normal(k5, (1536, 40), dtype=jnp.float32)
    q = jax.random.normal(k6, (1536, 24), dtype=jnp.float32)
    out4 = Concatenate(dim=1)([p, q])
    _check(out4, jnp.concatenate([p, q], axis=1), (1536, 64))

    # Case 5: sublane path with lane tiling (inner = 128*128 = 16384 > tile).
    u = jax.random.normal(k7, (2, 8, 128, 128), dtype=jnp.float32)
    v = jax.random.normal(k8, (2, 4, 128, 128), dtype=jnp.float32)
    out5 = Concatenate(dim=1)([u, v])
    _check(out5, jnp.concatenate([u, v], axis=1), (2, 12, 128, 128))

    # Case 6: concat along dim=0 (sublane path, outer == 1).
    m = jax.random.normal(k9, (16, 256), dtype=jnp.float32)
    n = jax.random.normal(k10, (8, 256), dtype=jnp.float32)
    out6 = Concatenate(dim=0)([m, n])
    _check(out6, jnp.concatenate([m, n], axis=0), (24, 256))

    # Case 7: bf16 lane path.
    tb = jax.random.normal(k1, (128, 48), dtype=jnp.bfloat16)
    out7 = Concatenate(dim=1)([tb, tb])
    _check(out7, jnp.concatenate([tb, tb], axis=1), (128, 96))

    # Case 8: tiny concat -> jnp short-circuit.
    s = jax.random.normal(k2, (4, 8), dtype=jnp.float32)
    out8 = Concatenate(dim=1)([s, s])
    _check(out8, jnp.concatenate([s, s], axis=1), (4, 16))

    print("KERNEL_OK")
</pallas_src>

<mosaic_0001>
module attributes {stable_mosaic.version = 11 : i64} {
  func.func @kernel(%arg0: i32, %arg1: memref<64x20xf32, #tpu.memory_space<vmem>>, %arg2: memref<64x20xf32, #tpu.memory_space<vmem>>, %arg3: memref<64x20xf32, #tpu.memory_space<vmem>>, %arg4: memref<64x60xf32, #tpu.memory_space<vmem>>) attributes {dimension_semantics = [#tpu.dimension_semantics<parallel>], iteration_bounds = array<i64: 1>, scalar_prefetch = 0 : i64, scratch_operands = 0 : i64, tpu.core_type = #tpu.core_type<tc>, window_params = [{transform_indices = @transform_0, window_bounds = array<i64: 64, 20>}, {transform_indices = @transform_1, window_bounds = array<i64: 64, 20>}, {transform_indices = @transform_2, window_bounds = array<i64: 64, 20>}, {transform_indices = @transform_3, window_bounds = array<i64: 64, 60>}]} {
    %c0 = arith.constant 0 : index
    %c0_0 = arith.constant 0 : index
    %0 = vector.load %arg1[%c0, %c0_0] : memref<64x20xf32, #tpu.memory_space<vmem>>, vector<64x20xf32>
    %c0_1 = arith.constant 0 : index
    %c0_2 = arith.constant 0 : index
    %1 = vector.load %arg4[%c0_1, %c0_2] : memref<64x60xf32, #tpu.memory_space<vmem>>, vector<64x20xf32>
    tpu.vector_store %arg4[%c0_1, %c0_2], %0 {strides = array<i32>} : memref<64x60xf32, #tpu.memory_space<vmem>>, vector<64x20xf32>,
    %c0_3 = arith.constant 0 : index
    %c0_4 = arith.constant 0 : index
    %2 = vector.load %arg2[%c0_3, %c0_4] : memref<64x20xf32, #tpu.memory_space<vmem>>, vector<64x20xf32>
    %c0_5 = arith.constant 0 : index
    %c20 = arith.constant 20 : index
    %3 = vector.load %arg4[%c0_5, %c20] : memref<64x60xf32, #tpu.memory_space<vmem>>, vector<64x20xf32>
    tpu.vector_store %arg4[%c0_5, %c20], %2 {strides = array<i32>} : memref<64x60xf32, #tpu.memory_space<vmem>>, vector<64x20xf32>,
    %c0_6 = arith.constant 0 : index
    %c0_7 = arith.constant 0 : index
    %4 = vector.load %arg3[%c0_6, %c0_7] : memref<64x20xf32, #tpu.memory_space<vmem>>, vector<64x20xf32>
    %c0_8 = arith.constant 0 : index
    %c40 = arith.constant 40 : index
    %5 = vector.load %arg4[%c0_8, %c40] : memref<64x60xf32, #tpu.memory_space<vmem>>, vector<64x20xf32>
    tpu.vector_store %arg4[%c0_8, %c40], %4 {strides = array<i32>} : memref<64x60xf32, #tpu.memory_space<vmem>>, vector<64x20xf32>,
    return
  }
  func.func @transform_0(%arg0: i32) -> (i32, i32) {
    %c0_i32 = arith.constant 0 : i32
    %c0_i32_0 = arith.constant 0 : i32
    return %arg0, %c0_i32 : i32, i32
  }
  func.func @transform_1(%arg0: i32) -> (i32, i32) {
    %c0_i32 = arith.constant 0 : i32
    %c0_i32_0 = arith.constant 0 : i32
    return %arg0, %c0_i32 : i32, i32
  }
  func.func @transform_2(%arg0: i32) -> (i32, i32) {
    %c0_i32 = arith.constant 0 : i32
    %c0_i32_0 = arith.constant 0 : i32
    return %arg0, %c0_i32 : i32, i32
  }
  func.func @transform_3(%arg0: i32) -> (i32, i32) {
    %c0_i32 = arith.constant 0 : i32
    %c0_i32_0 = arith.constant 0 : i32
    return %arg0, %c0_i32 : i32, i32
  }
}

</mosaic_0001>

<bundles_post_ra>
// kernel: tpu_custom_call.1
= control target key start
LH: loop header
LB: loop body
LE: loop exit
PB: predicated region body
PF: predicated region fallthrough
CT: control target
= control target key end

     0   :  { %s173_s16 = smov 20   ;;  %vm23_vm0 = vcmask 162816   ;;  %s305_s0 = inlined_call_operand.vmem [shape: f32[64,20], index: 0, kind: input, shape index: {}]   ;;  %s306_s1 = inlined_call_operand.vmem [shape: f32[64,20], index: 1, kind: input, shape index: {}]   ;;  %s307_s2 = inlined_call_operand.vmem [shape: f32[64,20], index: 2, kind: input, shape index: {}]   ;;  %s308_s3 = inlined_call_operand.hbm [shape: f32[64,60], index: 3, kind: output, shape index: {}]  }
   0x1   :  { %v34_v0 = vld [vmem:[%s306_s1 + $0x10] sm:$0xff]  ;;  %v32_v1 = vld [vmem:[%s306_s1] sm:$0xff]  ;;  %v35_v2 = vld [vmem:[%s306_s1 + $0x18] sm:$0xff] }
   0x2   :  { %52 = vrot.lane.b32.xlu1 %v34_v0, %s173_s16  ;;  %48 = vrot.lane.b32.xlu0 %v32_v1, %s173_s16  ;;  %v33_v3 = vld [vmem:[%s306_s1 + $0x8] sm:$0xff]  ;;  %v36_v5 = vld [vmem:[%s306_s1 + $0x20] sm:$0xff] }
   0x3   :  { %v37_v4 = vld [vmem:[%s306_s1 + $0x28] sm:$0xff]  ;;  %v17_v6 = vld [vmem:[%s305_s0 + $0x10] sm:$0xff]  ;;  %v15_v7 = vld [vmem:[%s305_s0] sm:$0xff] }
   0x4   :  { %v18_v8 = vld [vmem:[%s305_s0 + $0x18] sm:$0xff]  ;;  %26 = vst.msk [vmem:[#allocation2 + $0x10] sm:$0xff] %vm23_vm0, %v17_v6  ;;  %24 = vst.msk [vmem:[#allocation2] sm:$0xff] %vm23_vm0, %v15_v7  ;;  %v16_v9 = vld [vmem:[%s305_s0 + $0x8] sm:$0xff] }
   0x5   :  { %27 = vst.msk [vmem:[#allocation2 + $0x18] sm:$0xff] %vm23_vm0, %v18_v8  ;;  %v20_v10 = vld [vmem:[%s305_s0 + $0x28] sm:$0xff]  ;;  %v19_v11 = vld [vmem:[%s305_s0 + $0x20] sm:$0xff]  ;;  %25 = vst.msk [vmem:[#allocation2 + $0x8] sm:$0xff] %vm23_vm0, %v16_v9 }
   0x6   :  { %54 = vrot.lane.b32.xlu1 %v35_v2, %s173_s16  ;;  %50 = vrot.lane.b32.xlu0 %v33_v3, %s173_s16  ;;  %29 = vst.msk [vmem:[#allocation2 + $0x28] sm:$0xff] %vm23_vm0, %v20_v10  ;;  %28 = vst.msk [vmem:[#allocation2 + $0x20] sm:$0xff] %vm23_vm0, %v19_v11  ;;  %v22_v12 = vld [vmem:[%s305_s0 + $0x38] sm:$0xff]  ;;  %v21_v13 = vld [vmem:[%s305_s0 + $0x30] sm:$0xff] }
   0x7   :  { %8 = vsyncpa [#allocation3], 0  ;;  %31 = vst.msk [vmem:[#allocation2 + $0x38] sm:$0xff] %vm23_vm0, %v22_v12  ;;  %v39_v14 = vld [vmem:[%s306_s1 + $0x38] sm:$0xff]  ;;  %v38_v15 = vld [vmem:[%s306_s1 + $0x30] sm:$0xff]  ;;  %s174_s22 = smov 40  }
   0x8   :  { %30 = vst.msk [vmem:[#allocation2 + $0x30] sm:$0xff] %vm23_vm0, %v21_v13  ;;  %v82_v16 = vld [vmem:[%s307_s2 + $0x8] sm:$0xff]  ;;  %v81_v17 = vld [vmem:[%s307_s2] sm:$0xff]  ;;  %v84_v18 = vld [vmem:[%s307_s2 + $0x18] sm:$0xff]  ;;  %vm72_vm1 = vcmask 326816   ;;  %vm121_vm2 = vcmask 490816  }
   0x9   :  { %v83_v19 = vld [vmem:[%s307_s2 + $0x10] sm:$0xff]  ;;  %v86_v20 = vld [vmem:[%s307_s2 + $0x28] sm:$0xff]  ;;  %v85_v21 = vld [vmem:[%s307_s2 + $0x20] sm:$0xff] }
   0xa   :  { %58 = vrot.lane.b32.xlu1 %v37_v4, %s173_s16  ;;  %56 = vrot.lane.b32.xlu0 %v36_v5, %s173_s16  ;;  %v88_v22 = vld [vmem:[%s307_s2 + $0x38] sm:$0xff]  ;;  %v87_v23 = vld [vmem:[%s307_s2 + $0x30] sm:$0xff]  ;;  %s175_s2 = smov [#allocation2]  }
   0xb   :  { %s135_s6 = sshll.u32 %s175_s2, 4  ;;  %s136_s6 = int_to_ptr.vmem [resolvable:$true] %s135_s6 }
   0xc   :  { %s151_s7 = scalar_lea.vmem %s136_s6, 1024  ;;  %p156_p1 = scmp.lt.s32.totalorder %s136_s6, %s136_s6 }
   0xd   :  { %p152_p0 = scmp.ne.s32.totalorder %s136_s6, %s151_s7  ;;  %p157_p2 = scmp.lt.s32.totalorder %s151_s7, %s151_s7 }
   0xe   :  { %62 = vrot.lane.b32.xlu1 %v39_v14, %s173_s16  ;;  %60 = vrot.lane.b32.xlu0 %v38_v15, %s173_s16 }
   0xf   :  { %p158_p3 = por %p157_p2, %p156_p1 }
  0x11   :  { %p159_p4 = pnand %p158_p3, %p152_p0 }
  0x12   :  { %99 = vrot.lane.b32.xlu1 %v82_v16, %s174_s22  ;;  %97 = vrot.lane.b32.xlu0 %v81_v17, %s174_s22 }
  0x16   :  { %103 = vrot.lane.b32.xlu1 %v84_v18, %s174_s22  ;;  %101 = vrot.lane.b32.xlu0 %v83_v19, %s174_s22 }
  0x1a   :  { %107 = vrot.lane.b32.xlu1 %v86_v20, %s174_s22  ;;  %105 = vrot.lane.b32.xlu0 %v85_v21, %s174_s22 }
  0x1e   :  { %111 = vrot.lane.b32.xlu1 %v88_v22, %s174_s22  ;;  %109 = vrot.lane.b32.xlu0 %v87_v23, %s174_s22 }
  0x74   :  { %v53_v24 = vpop.permute.xlu1 %52  ;;  %v49_v25 = vpop.permute.xlu0 %48 }
  0x75   :  { %75 = vst.msk [vmem:[#allocation2 + $0x10] sm:$0xff] %vm72_vm1, %v53_v24  ;;  %73 = vst.msk [vmem:[#allocation2] sm:$0xff] %vm72_vm1, %v49_v25 }
  0x78   :  { %v55_v26 = vpop.permute.xlu1 %54  ;;  %v51_v27 = vpop.permute.xlu0 %50 }
  0x79   :  { %76 = vst.msk [vmem:[#allocation2 + $0x18] sm:$0xff] %vm72_vm1, %v55_v26  ;;  %74 = vst.msk [vmem:[#allocation2 + $0x8] sm:$0xff] %vm72_vm1, %v51_v27 }
  0x7c   :  { %v59_v28 = vpop.permute.xlu1 %58  ;;  %v57_v29 = vpop.permute.xlu0 %56 }
  0x7d   :  { %78 = vst.msk [vmem:[#allocation2 + $0x28] sm:$0xff] %vm72_vm1, %v59_v28  ;;  %77 = vst.msk [vmem:[#allocation2 + $0x20] sm:$0xff] %vm72_vm1, %v57_v29 }
  0x80   :  { %v63_v30 = vpop.permute.xlu1 %62  ;;  %v61_v31 = vpop.permute.xlu0 %60 }
  0x81   :  { %80 = vst.msk [vmem:[#allocation2 + $0x38] sm:$0xff] %vm72_vm1, %v63_v30  ;;  %79 = vst.msk [vmem:[#allocation2 + $0x30] sm:$0xff] %vm72_vm1, %v61_v31 }
  0x84   :  { %v100_v32 = vpop.permute.xlu1 %99  ;;  %v98_v33 = vpop.permute.xlu0 %97 }
  0x85   :  { %123 = vst.msk [vmem:[#allocation2 + $0x8] sm:$0xff] %vm121_vm2, %v100_v32  ;;  %122 = vst.msk [vmem:[#allocation2] sm:$0xff] %vm121_vm2, %v98_v33 }
  0x88   :  { %v104_v34 = vpop.permute.xlu1 %103  ;;  %v102_v35 = vpop.permute.xlu0 %101 }
  0x89   :  { %125 = vst.msk [vmem:[#allocation2 + $0x18] sm:$0xff] %vm121_vm2, %v104_v34  ;;  %124 = vst.msk [vmem:[#allocation2 + $0x10] sm:$0xff] %vm121_vm2, %v102_v35 }
  0x8c   :  { %v108_v36 = vpop.permute.xlu1 %107  ;;  %v106_v37 = vpop.permute.xlu0 %105 }
  0x8d   :  { %127 = vst.msk [vmem:[#allocation2 + $0x28] sm:$0xff] %vm121_vm2, %v108_v36  ;;  %126 = vst.msk [vmem:[#allocation2 + $0x20] sm:$0xff] %vm121_vm2, %v106_v37 }
  0x90   :  { %v112_v38 = vpop.permute.xlu1 %111  ;;  %v110_v39 = vpop.permute.xlu0 %109 }
  0x91   :  { %129 = vst.msk [vmem:[#allocation2 + $0x38] sm:$0xff] %vm121_vm2, %v112_v38  ;;  %128 = vst.msk [vmem:[#allocation2 + $0x30] sm:$0xff] %vm121_vm2, %v110_v39 }
  0x92   :  { %162 = shalt.err (!%p159_p4)
}
  0x93   :  { %s176_s8 = smov 128   ;;  %s177_s9 = smov 8  }
  0x94   :  { %141 = dma.vmem_to_hbm [thread:$0]  %s136_s6, 1024, %s308_s3, [#allocation3], %s176_s8, %s176_s8, %s177_s9  }
  0x95   :  { %171 = dma.done.wait [#allocation3], 1024  }
  0x96   :  { %172 = vsyncadd [#allocation3], 4294966272 }
  0x97   :  { %145 = vsyncpa [#allocation3], 1 }

</bundles_post_ra>
